<compile_context>
chip_gen: v5e
topology: v5e:2x2
jax: 0.10.0
libtpu: 0.0.40
codegen_flags: <defaults>
</compile_context>

<pallas_src>
import jax
import jax.numpy as jnp
from jax.experimental import pallas as pl
from jax.experimental.pallas import tpu as pltpu


_LANES = 128      # vreg lane width
_SUBLANES = 8     # vreg sublane count (f32)


def _round_up(x, m):
    return ((x + m - 1) // m) * m


def _annotation_kernel(ann_ref, out_ref):
    """ann_ref: (TM, G) int32 — G consecutive flattened annotation indices per row.
       out_ref: (TM, G*C)    — lane-dense packed embedding rows.

    out[t, j*C + c] = 1  iff  ann[t, j] == c  and  c != 0   (weight[0, 0] == 0)
    """
    tm, gc = out_ref.shape
    g = ann_ref.shape[1]
    c = gc // g

    ann = ann_ref[...]                                               # (TM, G)
    group_offset = jax.lax.broadcasted_iota(jnp.int32, (tm, g), 1) * c
    # Sanitize once on the small (TM, G) array:
    #  * ann == 0  -> all-zero row (row 0 of the table is all zeros),
    #  * ann < 0 or ann >= C -> all-zero row, and crucially it must NOT match a
    #    lane belonging to another packed row's group, so map it to -1.
    valid = jnp.logical_and(ann > 0, ann < c)
    target = jnp.where(valid, ann + group_offset, -1)                # (TM, G)

    # Pure VPU: for each group j, its hits are confined to lanes [j*C,(j+1)*C)
    # because target[:, j] is either -1 or in that range.
    lanes = jax.lax.broadcasted_iota(jnp.int32, (tm, gc), 1)         # (TM, G*C)
    hit = lanes == target[:, 0:1]
    for j in range(1, g):
        hit = jnp.logical_or(hit, lanes == target[:, j:j + 1])
    out_ref[...] = hit.astype(out_ref.dtype)


def annotation_model_forward(annotation, alignment, max_cardinality, *,
                             out_dtype=jnp.float32,
                             target_block_out_bytes=2 << 20,
                             vmem_budget_bytes=12 << 20):
    """Pallas equivalent of AnnotationModel.forward((annotation, alignment)).

    out_dtype=jnp.bfloat16 halves HBM writeback (values are exactly 0/1) if the
    downstream consumer allows it; default float32 matches nn.Embedding.
    """
    del alignment  # the reference forward ignores the alignment tensor
    B, S = annotation.shape
    rows = B * S
    C = int(max_cardinality)

    # Lane packing factor: fold g rows into the 128-lane dimension when C < 128.
    g = _LANES // C if (C < _LANES and _LANES % C == 0) else 1
    gc = g * C

    ann_flat = annotation.reshape(-1).astype(jnp.int32)
    pad = (-rows) % g
    if pad:  # rare; only when rows is not a multiple of g
        ann_flat = jnp.pad(ann_flat, (0, pad))
    padded_rows = rows + pad
    R = padded_rows // g                       # packed rows
    ann_packed = ann_flat.reshape(R, g)

    # ---- block-size selection (packed rows per grid step) -------------------
    out_bytes = jnp.dtype(out_dtype).itemsize
    # Target ~2 MiB of real output per step (amortizes ~0.35 us step overhead).
    tm = max(_SUBLANES, target_block_out_bytes // (gc * out_bytes))
    # VMEM guard: double-buffered output + input tiles (lane-padded to 128) plus
    # a generous allowance (4 full-width int32 temporaries) for the in-kernel
    # iota / broadcast / compare intermediates.  Keeps total pipeline VMEM well
    # under the default scoped limit on v5e (16 MiB) / v6e / v7x (32 MiB).
    out_row_vmem = _round_up(gc, _LANES) * out_bytes
    in_row_vmem = _round_up(g, _LANES) * 4
    tmp_row_vmem = 4 * _round_up(gc, _LANES) * 4
    per_row_vmem = 2 * out_row_vmem + 2 * in_row_vmem + tmp_row_vmem
    tm = min(tm, max(_SUBLANES, vmem_budget_bytes // per_row_vmem))
    tm = max(_SUBLANES, (tm // _SUBLANES) * _SUBLANES)
    if tm >= R:
        tm = R  # single block == full array dims (always a legal block shape)

    grid = (pl.cdiv(R, tm),)
    out2d = pl.pallas_call(
        _annotation_kernel,
        out_shape=jax.ShapeDtypeStruct((R, gc), out_dtype),
        grid=grid,
        in_specs=[pl.BlockSpec((tm, g), lambda i: (i, 0))],
        out_specs=pl.BlockSpec((tm, gc), lambda i: (i, 0)),
        compiler_params=pltpu.CompilerParams(
            dimension_semantics=("parallel",)),
    )(ann_packed)

    # (R, g*C) and (padded_rows, C) share the same row-major byte order, so this
    # reshape is metadata-only; the slice only triggers when padding occurred.
    out_flat = out2d.reshape(padded_rows, C)
    if pad:
        out_flat = out_flat[:rows]
    return out_flat.reshape(B, S, C)


def make_annotation_model_params(max_cardinality):
    """Deterministic parameter init matching the module's __init__:
    identity embedding matrix with weight[0, 0] = 0.  (Used only for the
    pure-JAX reference check; the kernel itself needs no weight input.)"""
    w = jnp.eye(max_cardinality, dtype=jnp.float32)
    w = w.at[0, 0].set(0.0)
    return w


if __name__ == "__main__":
    key = jax.random.PRNGKey(0)
    batch, seq, max_cardinality = 2, 8, 16

    annotation = jax.random.randint(
        key, (batch, seq), minval=0, maxval=max_cardinality, dtype=jnp.int32
    )
    alignment = jnp.eye(seq, dtype=jnp.float32)  # identity, ignored by forward

    out = annotation_model_forward(annotation, alignment, max_cardinality)
    out = jax.block_until_ready(out)

    # Reference check in plain JAX (nn.Embedding == table[indices]).
    emb_weight = make_annotation_model_params(max_cardinality)
    ref = emb_weight[annotation]
    assert out.shape == (batch, seq, max_cardinality)
    assert out.dtype == jnp.float32
    assert jnp.allclose(out, ref), "mismatch vs reference embedding lookup"

    print("KERNEL_OK")
</pallas_src>

<mosaic_0001>
module attributes {stable_mosaic.version = 11 : i64} {
  func.func @_annotation_kernel(%arg0: i32, %arg1: memref<2x8xi32, #tpu.memory_space<vmem>>, %arg2: memref<2x128xf32, #tpu.memory_space<vmem>>) attributes {dimension_semantics = [#tpu.dimension_semantics<parallel>], iteration_bounds = array<i64: 1>, scalar_prefetch = 0 : i64, scratch_operands = 0 : i64, tpu.core_type = #tpu.core_type<tc>, window_params = [{transform_indices = @transform_0, window_bounds = array<i64: 2, 8>}, {transform_indices = @transform_1, window_bounds = array<i64: 2, 128>}]} {
    %c0 = arith.constant 0 : index
    %c0_0 = arith.constant 0 : index
    %0 = vector.load %arg1[%c0, %c0_0] : memref<2x8xi32, #tpu.memory_space<vmem>>, vector<2x8xi32>
    %1 = tpu.iota {dimensions = array<i32: 1>} : vector<2x8xi32>
    %c16_i32 = arith.constant 16 : i32
    %2 = vector.broadcast %c16_i32 : i32 to vector<2x8xi32>
    %3 = arith.muli %1, %2 : vector<2x8xi32>
    %c0_i32 = arith.constant 0 : i32
    %4 = vector.broadcast %c0_i32 : i32 to vector<2x8xi32>
    %5 = arith.cmpi sgt, %0, %4 : vector<2x8xi32>
    %c16_i32_1 = arith.constant 16 : i32
    %6 = vector.broadcast %c16_i32_1 : i32 to vector<2x8xi32>
    %7 = arith.cmpi slt, %0, %6 : vector<2x8xi32>
    %8 = arith.andi %5, %7 : vector<2x8xi1>
    %9 = arith.addi %0, %3 : vector<2x8xi32>
    %c-1_i32 = arith.constant -1 : i32
    %10 = vector.broadcast %c-1_i32 : i32 to vector<2x8xi32>
    %11 = arith.select %8, %9, %10 : vector<2x8xi1>, vector<2x8xi32>
    %12 = tpu.iota {dimensions = array<i32: 1>} : vector<2x128xi32>
    %13 = vector.extract_strided_slice %11 {offsets = [0, 0], sizes = [2, 1], strides = [1, 1]} : vector<2x8xi32> to vector<2x1xi32>
    %14 = vector.broadcast %13 : vector<2x1xi32> to vector<2x128xi32>
    %15 = arith.cmpi eq, %12, %14 : vector<2x128xi32>
    %16 = vector.extract_strided_slice %11 {offsets = [0, 1], sizes = [2, 1], strides = [1, 1]} : vector<2x8xi32> to vector<2x1xi32>
    %17 = vector.broadcast %16 : vector<2x1xi32> to vector<2x128xi32>
    %18 = arith.cmpi eq, %12, %17 : vector<2x128xi32>
    %19 = arith.ori %15, %18 : vector<2x128xi1>
    %20 = vector.extract_strided_slice %11 {offsets = [0, 2], sizes = [2, 1], strides = [1, 1]} : vector<2x8xi32> to vector<2x1xi32>
    %21 = vector.broadcast %20 : vector<2x1xi32> to vector<2x128xi32>
    %22 = arith.cmpi eq, %12, %21 : vector<2x128xi32>
    %23 = arith.ori %19, %22 : vector<2x128xi1>
    %24 = vector.extract_strided_slice %11 {offsets = [0, 3], sizes = [2, 1], strides = [1, 1]} : vector<2x8xi32> to vector<2x1xi32>
    %25 = vector.broadcast %24 : vector<2x1xi32> to vector<2x128xi32>
    %26 = arith.cmpi eq, %12, %25 : vector<2x128xi32>
    %27 = arith.ori %23, %26 : vector<2x128xi1>
    %28 = vector.extract_strided_slice %11 {offsets = [0, 4], sizes = [2, 1], strides = [1, 1]} : vector<2x8xi32> to vector<2x1xi32>
    %29 = vector.broadcast %28 : vector<2x1xi32> to vector<2x128xi32>
    %30 = arith.cmpi eq, %12, %29 : vector<2x128xi32>
    %31 = arith.ori %27, %30 : vector<2x128xi1>
    %32 = vector.extract_strided_slice %11 {offsets = [0, 5], sizes = [2, 1], strides = [1, 1]} : vector<2x8xi32> to vector<2x1xi32>
    %33 = vector.broadcast %32 : vector<2x1xi32> to vector<2x128xi32>
    %34 = arith.cmpi eq, %12, %33 : vector<2x128xi32>
    %35 = arith.ori %31, %34 : vector<2x128xi1>
    %36 = vector.extract_strided_slice %11 {offsets = [0, 6], sizes = [2, 1], strides = [1, 1]} : vector<2x8xi32> to vector<2x1xi32>
    %37 = vector.broadcast %36 : vector<2x1xi32> to vector<2x128xi32>
    %38 = arith.cmpi eq, %12, %37 : vector<2x128xi32>
    %39 = arith.ori %35, %38 : vector<2x128xi1>
    %40 = vector.extract_strided_slice %11 {offsets = [0, 7], sizes = [2, 1], strides = [1, 1]} : vector<2x8xi32> to vector<2x1xi32>
    %41 = vector.broadcast %40 : vector<2x1xi32> to vector<2x128xi32>
    %42 = arith.cmpi eq, %12, %41 : vector<2x128xi32>
    %43 = arith.ori %39, %42 : vector<2x128xi1>
    %44 = arith.extui %43 : vector<2x128xi1> to vector<2x128xi32>
    %45 = arith.sitofp %44 : vector<2x128xi32> to vector<2x128xf32>
    %c0_2 = arith.constant 0 : index
    %c0_3 = arith.constant 0 : index
    %46 = vector.load %arg2[%c0_2, %c0_3] : memref<2x128xf32, #tpu.memory_space<vmem>>, vector<2x128xf32>
    tpu.vector_store %arg2[%c0_2, %c0_3], %45 {strides = array<i32>} : memref<2x128xf32, #tpu.memory_space<vmem>>, vector<2x128xf32>,
    return
  }
  func.func @transform_0(%arg0: i32) -> (i32, i32) {
    %c0_i32 = arith.constant 0 : i32
    %c0_i32_0 = arith.constant 0 : i32
    return %arg0, %c0_i32 : i32, i32
  }
  func.func @transform_1(%arg0: i32) -> (i32, i32) {
    %c0_i32 = arith.constant 0 : i32
    %c0_i32_0 = arith.constant 0 : i32
    return %arg0, %c0_i32 : i32, i32
  }
}

</mosaic_0001>

<bundles_post_ra>
// kernel: tpu_custom_call.1
= control target key start
LH: loop header
LB: loop body
LE: loop exit
PB: predicated region body
PF: predicated region fallthrough
CT: control target
= control target key end

     0   :  { %6 = vsyncpa [#allocation3], 0  ;;  %s191_s0 = inlined_call_operand.hbm [shape: s32[2,8], index: 0, kind: input, shape index: {}]   ;;  %s192_s1 = inlined_call_operand.hbm [shape: f32[2,128], index: 1, kind: output, shape index: {}]  }
   0x1   :  { %7 = vsyncpa [#allocation4], 0  ;;  %s13_s8 = sshll.u32 %s191_s0, 4  ;;  %s164_s9 = smov [#allocation2]   ;;  %s14_s8 = int_to_ptr.hbm [resolvable:$true] %s13_s8 }
   0x2   :  { %s15_s10 = sshll.u32 %s164_s9, 4  ;;  %s16_s10 = int_to_ptr.vmem [resolvable:$true] %s15_s10 }
   0x3   :  { %18 = dma.hbm_to_vmem [thread:$0]  %s14_s8, 32, %s16_s10, [#allocation3]  }
   0x4   :  { %160 = dma.done.wait [#allocation3], 32  }
   0x5   :  { %161 = vsyncadd [#allocation3], 4294967264  ;;  %v24_v0 = vlaneseq  ;;  %v165_v1 = vmov 2   ;;  %v166_v2 = vmov 0   ;;  %v167_v4 = vmov 4   ;;  %s173_s0 = smov [#allocation5]  }
   0x6   :  { %105 = vset.pattern.permute.xlu1 %v165_v1  ;;  %103 = vset.pattern.permute.xlu0 %v166_v2  ;;  %v23_v6 = vld [vmem:[#allocation2] sm:$0x3]  ;;  %v168_v9 = vmov 3   ;;  %v169_v10 = vmov 1   ;;  %v170_v11 = vmov 5   ;;  %v171_v12 = vmov 6  }
   0x7   :  { %v25_v3 = vand.u32 127, %v24_v0  ;;  %107 = vset.pattern.permute.xlu2 %v167_v4  ;;  %vm27_vm0 = vcmp.gt.s32.totalorder %v23_v6, 0  ;;  %vm28_vm1 = vcmp.lt.s32.totalorder %v23_v6, 16  ;;  %v172_v13 = vmov 7   ;;  %s79_s11 = sshll.u32 %s173_s0, 4  ;;  %s81_s14 = sshll.u32 %s192_s1, 4  ;;  %s80_s11 = int_to_ptr.vmem [resolvable:$true] %s79_s11  ;;  %s82_s14 = int_to_ptr.hbm [resolvable:$true] %s81_s14 }
   0x8   :  { %vm29_vm2 = vmand %vm27_vm0, %vm28_vm1  ;;  %v174_v22 = vmov 0.0  }
   0x9   :  { %v26_v5 = vmul.u32 16, %v25_v3 }
   0xb   :  { %v30_v7 = vadd.s32 %v26_v5, %v23_v6 }
   0xd   :  { %v31_v8 = vsel %vm29_vm2, %v30_v7, 4294967295 }
   0xe   :  { %42 = vperm.xlu1 %105, %v31_v8   ;;  %33 = vperm.xlu0 %103, %v31_v8  }
   0xf   :  { %52 = vperm.xlu2 %107, %v31_v8  }
  0x16   :  { %106 = vset.pattern.permute.xlu1 %v168_v9  ;;  %104 = vset.pattern.permute.xlu0 %v169_v10 }
  0x17   :  { %47 = vperm.xlu1 %106, %v31_v8   ;;  %37 = vperm.xlu0 %104, %v31_v8  }
  0x18   :  { %108 = vset.pattern.permute.xlu2 %v170_v11 }
  0x19   :  { %57 = vperm.xlu2 %108, %v31_v8  }
  0x1f   :  { %109 = vset.pattern.permute.xlu1 %v171_v12  ;;  %111 = vset.pattern.permute.xlu0 %v172_v13 }
  0x20   :  { %62 = vperm.xlu1 %109, %v31_v8  }
  0x21   :  { %110 = vset.pattern.permute.xlu2 %v172_v13 }
  0x22   :  { %67 = vperm.xlu2 %110, %v31_v8  }
  0x69   :  { %v53_v14 = vpop.permute.xlu2 %52 }
  0x6a   :  { %vm54_vm10 = vcmp.eq.s32.totalorder %v25_v3, %v53_v14 }
  0x73   :  { %v58_v17 = vpop.permute.xlu2 %57 }
  0x74   :  { %vm59_vm12 = vcmp.eq.s32.totalorder %v25_v3, %v58_v17 }
  0x7c   :  { %v68_v20 = vpop.permute.xlu2 %67 }
  0x7d   :  { %vm69_vm13 = vcmp.eq.s32.totalorder %v25_v3, %v68_v20 }
  0x80   :  { %v43_v15 = vpop.permute.xlu1 %42  ;;  %v34_v16 = vpop.permute.xlu0 %33 }
  0x81   :  { %vm35_vm3 = vcmp.eq.s32.totalorder %v25_v3, %v34_v16  ;;  %vm44_vm5 = vcmp.eq.s32.totalorder %v25_v3, %v43_v15 }
  0x89   :  { %v48_v18 = vpop.permute.xlu1 %47  ;;  %v38_v19 = vpop.permute.xlu0 %37 }
  0x8a   :  { %vm39_vm4 = vcmp.eq.s32.totalorder %v25_v3, %v38_v19  ;;  %vm49_vm7 = vcmp.eq.s32.totalorder %v25_v3, %v48_v18 }
  0x8b   :  { %vm40_vm6 = vmor %vm35_vm3, %vm39_vm4 }
  0x8c   :  { %vm45_vm8 = vmor %vm40_vm6, %vm44_vm5 }
  0x8d   :  { %vm50_vm9 = vmor %vm45_vm8, %vm49_vm7 }
  0x8e   :  { %vm55_vm11 = vmor %vm50_vm9, %vm54_vm10 }
  0x8f   :  { %vm60_vm14 = vmor %vm55_vm11, %vm59_vm12 }
  0x92   :  { %v63_v21 = vpop.permute.xlu1 %62 }
  0x93   :  { %vm64_vm15 = vcmp.eq.s32.totalorder %v25_v3, %v63_v21 }
  0x94   :  { %vm65_vm0 = vmor %vm60_vm14, %vm64_vm15 }
  0x95   :  { %vm70_vm1 = vmor %vm65_vm0, %vm69_vm13 }
  0x96   :  { %v91_v23 = vsel %vm70_vm1, 1.0, %v174_v22 }
  0x97   :  { %73 = vst [vmem:[#allocation5] sm:$0x3] %v91_v23 }
  0x98   :  { %84 = dma.vmem_to_hbm [thread:$0]  %s80_s11, 32, %s82_s14, [#allocation4]  }
  0x99   :  { %162 = dma.done.wait [#allocation4], 32  }
  0x9a   :  { %163 = vsyncadd [#allocation4], 4294967264 }
  0x9b   :  { %89 = vsyncpa [#allocation3], 1 }
  0x9c   :  { %90 = vsyncpa [#allocation4], 1 }

</bundles_post_ra>
